<compile_context>
chip_gen: v7x
topology: tpu7x:2x2x1
jax: 0.10.0
libtpu: 0.0.40
codegen_flags: <defaults>
</compile_context>

<pallas_src>
import functools

import jax
import jax.numpy as jnp
from jax.experimental import pallas as pl
from jax.experimental.pallas import tpu as pltpu


def _self_attention_kernel(x_res_ref, x_aug_ref, wqkv_ref, gamma_ref, o_ref,
                           *, c8, c, bg, n):
    """One grid step == one group of `bg` batch elements packed on lanes.

    x_res_ref : (1, C,   bg*N) f32   residual slab (aliased with the output)
    x_aug_ref : (1, C+1, bg*N) bf16  x with a ones row appended (bias folding)
    wqkv_ref  : (2*C8+C, C+1)  bf16  fused [Wq; Wk; Wv | bias] weight
    gamma_ref : (1,) f32 in SMEM
    o_ref     : (1, C,   bg*N) f32
    """
    x_aug = x_aug_ref[0]                                      # (C+1, bg*N) bf16

    # Fused Q/K/V 1x1-conv projection + bias in a single lane-dense MXU
    # matmul: (Co, C+1) @ (C+1, bg*N) -> (Co, bg*N), f32 accumulation.
    qkv = jnp.dot(wqkv_ref[...], x_aug, preferred_element_type=jnp.float32)

    # Attention is per batch element: slice that element's N lanes out of the
    # group slab.  `bg` is small, so this static unrolled loop is fine.
    outs = []
    for b in range(bg):
        lo, hi = b * n, (b + 1) * n
        q = qkv[0:c8, lo:hi].astype(jnp.bfloat16)             # (C8, N)
        k = qkv[c8:2 * c8, lo:hi].astype(jnp.bfloat16)        # (C8, N)
        v = qkv[2 * c8:, lo:hi].astype(jnp.bfloat16)          # (C,  N)

        # s[i, j] = sum_d q[d, i] k[d, j]  (trans_a form, no .T materialized).
        s = jax.lax.dot_general(q, k, (((0,), (0,)), ((), ())),
                                preferred_element_type=jnp.float32)   # (N, N)

        # Row softmax over j, in f32; reciprocal runs on the EUP slot.
        s = s - jnp.max(s, axis=-1, keepdims=True)
        e = jnp.exp(s)
        p = e * pl.reciprocal(jnp.sum(e, axis=-1, keepdims=True), approx=True)

        # out[c, i] = sum_j v[c, j] p[i, j]  (trans_b form == v @ attn^T).
        outs.append(jax.lax.dot_general(
            v, p.astype(jnp.bfloat16), (((1,), (1,)), ((), ())),
            preferred_element_type=jnp.float32))               # (C, N)

    # Re-assemble the lane-dense group slab and do one unmasked full store.
    attn_out = jnp.concatenate(outs, axis=1) if bg > 1 else outs[0]
    o_ref[0] = gamma_ref[0] * attn_out + x_res_ref[0]


def _pick_batch_group(batch, n, lanes=128):
    """Smallest divisor of `batch` whose group makes the lane dim >= `lanes`."""
    target = min(batch, max(1, (lanes + n - 1) // n))
    for bg in range(target, batch + 1):
        if batch % bg == 0:
            return bg
    return batch


def prepare_self_attention_params(wq, bq, wk, bk, wv, bv, gamma):
    """Fold the three 1x1-conv weights + biases into one bf16 matrix.

    Called once at parameter-preparation time, NOT per forward call (hoists
    the concat/cast out of the forward, per review)."""
    c8, c = wq.shape[0], wq.shape[1]
    w = jnp.concatenate([wq.reshape(c8, c), wk.reshape(c8, c),
                         wv.reshape(c, c)], axis=0).astype(jnp.float32)
    b = jnp.concatenate([bq, bk, bv]).reshape(-1, 1).astype(jnp.float32)
    wqkv_aug = jnp.concatenate([w, b], axis=1).astype(jnp.bfloat16)  # (Co, C+1)
    gamma1 = jnp.asarray(gamma, jnp.float32).reshape(1)              # SMEM scalar
    return wqkv_aug, gamma1


def self_attention(x_nchw, wqkv_aug, gamma1):
    """x_nchw: (B, C, H, W) f32.  wqkv_aug/gamma1 from prepare_self_attention_params."""
    B, C, H, W = x_nchw.shape
    N = H * W
    Co = wqkv_aug.shape[0]
    C8 = (Co - C) // 2

    bg = _pick_batch_group(B, N)     # batch-group size for lane-dense packing
    G = B // bg                      # grid steps (parallel across v7x TCs)
    L = bg * N                       # lane width of every slab (>= 128)

    # Lane-dense repack (tiny transpose; x is only B*C*N*4 bytes): residual
    # slab stays f32, augmented bf16 slab gets a ones row for bias folding.
    x_cn = x_nchw.astype(jnp.float32).reshape(B, C, N)
    x_res = x_cn.reshape(G, bg, C, N).transpose(0, 2, 1, 3).reshape(G, C, L)
    ones = jnp.ones((G, 1, L), jnp.float32)
    x_aug = jnp.concatenate([x_res, ones], axis=1).astype(jnp.bfloat16)

    kernel = functools.partial(_self_attention_kernel, c8=C8, c=C, bg=bg, n=N)

    out = pl.pallas_call(
        kernel,
        out_shape=jax.ShapeDtypeStruct((G, C, L), jnp.float32),
        grid_spec=pltpu.PrefetchScalarGridSpec(
            num_scalar_prefetch=0,
            grid=(G,),
            in_specs=[
                pl.BlockSpec((1, C, L), lambda g: (g, 0, 0)),       # residual x
                pl.BlockSpec((1, C + 1, L), lambda g: (g, 0, 0)),   # [x; ones]
                pl.BlockSpec((Co, C + 1), lambda g: (0, 0)),        # fused W|b
                pl.BlockSpec(memory_space=pltpu.MemorySpace.SMEM),  # gamma
            ],
            out_specs=pl.BlockSpec((1, C, L), lambda g: (g, 0, 0)),
        ),
        # Residual input is re-used as the output buffer.
        input_output_aliases={0: 0},
        compiler_params=pltpu.CompilerParams(
            dimension_semantics=("parallel",),
            vmem_limit_bytes=32 * 1024 * 1024,
        ),
    )(x_res, x_aug, wqkv_aug, gamma1)

    # Unpack: inverse of the lane packing, then back to NCHW (reshape only).
    return out.reshape(G, C, bg, N).transpose(0, 2, 1, 3).reshape(B, C, H, W)


def self_attention_ref(x, wq, bq, wk, bk, wv, bv, gamma):
    """Pure-JAX f32 mirror of the PyTorch forward (for verification)."""
    B, C, H, W = x.shape
    N = H * W

    def conv1x1(inp, w, b):   # inp (B,C,H,W), w (Co,C,1,1) -> (B,Co,N)
        co = w.shape[0]
        y = jnp.einsum('bcn,oc->bon', inp.reshape(B, C, N), w.reshape(co, C))
        return y + b[None, :, None]

    q = jnp.transpose(conv1x1(x, wq, bq), (0, 2, 1))    # (B, N, C8)
    k = conv1x1(x, wk, bk)                              # (B, C8, N)
    attn = jax.nn.softmax(jnp.einsum('bnc,bcm->bnm', q, k), axis=-1)  # (B, N, N)
    v = conv1x1(x, wv, bv)                              # (B, C, N)
    out = jnp.einsum('bcn,bmn->bcm', v, attn)           # (B, C, N)
    return gamma[0] * out.reshape(B, C, H, W) + x


if __name__ == "__main__":
    B, C, H, W = 2, 32, 8, 8          # small CIFAR-ish shapes; C//8 = 4
    C8 = C // 8

    key = jax.random.PRNGKey(0)
    ks = jax.random.split(key, 7)
    x = jax.random.normal(ks[0], (B, C, H, W), jnp.float32)
    # Conv2d(C, C//8, 1) / Conv2d(C, C, 1) parameter shapes from __init__.
    wq = jax.random.normal(ks[1], (C8, C, 1, 1), jnp.float32) * 0.1
    bq = jax.random.normal(ks[2], (C8,), jnp.float32) * 0.1
    wk = jax.random.normal(ks[3], (C8, C, 1, 1), jnp.float32) * 0.1
    bk = jax.random.normal(ks[4], (C8,), jnp.float32) * 0.1
    wv = jax.random.normal(ks[5], (C, C, 1, 1), jnp.float32) * 0.1
    bv = jax.random.normal(ks[6], (C,), jnp.float32) * 0.1
    # nn.Parameter(torch.zeros(1)) has shape (1,); use a nonzero value so the
    # attention path is actually exercised (gamma=0 would reduce to identity).
    gamma = jnp.full((1,), 0.5, jnp.float32)

    # Weight fusion done once, outside the jitted forward.
    wqkv_aug, gamma1 = prepare_self_attention_params(wq, bq, wk, bk, wv, bv, gamma)

    fwd = jax.jit(self_attention)
    out = jax.block_until_ready(fwd(x, wqkv_aug, gamma1))
    ref = jax.block_until_ready(self_attention_ref(x, wq, bq, wk, bk, wv, bv, gamma))

    assert out.shape == (B, C, H, W)
    max_err = float(jnp.max(jnp.abs(out - ref)))
    # Tolerance covers bf16 MXU feeds (f32 accumulation) and the EUP
    # approximate reciprocal in the softmax vs. the pure-f32 reference.
    assert jnp.allclose(out, ref, atol=3e-2, rtol=1e-2), max_err
    print("KERNEL_OK")
</pallas_src>

<mosaic_0001>
module attributes {stable_mosaic.version = 11 : i64} {
  func.func @_self_attention_kernel(%arg0: i32, %arg1: memref<1x32x128xf32, #tpu.memory_space<vmem>>, %arg2: memref<1x33x128xbf16, #tpu.memory_space<vmem>>, %arg3: memref<40x33xbf16, #tpu.memory_space<vmem>>, %arg4: memref<1xf32, #tpu.memory_space<smem>>, %arg5: memref<1x32x128xf32, #tpu.memory_space<vmem>>) attributes {dimension_semantics = [#tpu.dimension_semantics<parallel>], iteration_bounds = array<i64: 1>, scalar_prefetch = 0 : i64, scratch_operands = 0 : i64, tpu.core_type = #tpu.core_type<tc>, window_params = [{transform_indices = @transform_0, window_bounds = array<i64: 1, 32, 128>}, {transform_indices = @transform_1, window_bounds = array<i64: 1, 33, 128>}, {pipeline_mode = #tpu.pipeline_mode<synchronous>, transform_indices = @transform_2, window_bounds = array<i64: 40, 33>}, {transform_indices = @transform_3, window_bounds = array<i64: 1>}, {transform_indices = @transform_4, window_bounds = array<i64: 1, 32, 128>}]} {
    %c0 = arith.constant 0 : index
    %c0_0 = arith.constant 0 : index
    %c0_1 = arith.constant 0 : index
    %0 = vector.load %arg2[%c0, %c0_0, %c0_1] : memref<1x33x128xbf16, #tpu.memory_space<vmem>>, vector<1x33x128xbf16>
    %1 = vector.shape_cast %0 : vector<1x33x128xbf16> to vector<33x128xbf16>
    %c0_2 = arith.constant 0 : index
    %c0_3 = arith.constant 0 : index
    %2 = vector.load %arg3[%c0_2, %c0_3] : memref<40x33xbf16, #tpu.memory_space<vmem>>, vector<40x33xbf16>
    %cst = arith.constant dense<0.000000e+00> : vector<40x128xf32>
    %3 = tpu.matmul %2, %1, %cst {dimension_numbers = #tpu.dot_dimension_numbers<[1], [0], [0], [1], [0, 0, 1, 1], [], []>} : vector<40x33xbf16>, vector<33x128xbf16>, vector<40x128xf32> -> vector<40x128xf32>
    %4 = vector.extract_strided_slice %3 {offsets = [0, 0], sizes = [4, 64], strides = [1, 1]} : vector<40x128xf32> to vector<4x64xf32>
    %5 = arith.truncf %4 : vector<4x64xf32> to vector<4x64xbf16>
    %6 = vector.extract_strided_slice %3 {offsets = [4, 0], sizes = [4, 64], strides = [1, 1]} : vector<40x128xf32> to vector<4x64xf32>
    %7 = arith.truncf %6 : vector<4x64xf32> to vector<4x64xbf16>
    %8 = vector.extract_strided_slice %3 {offsets = [8, 0], sizes = [32, 64], strides = [1, 1]} : vector<40x128xf32> to vector<32x64xf32>
    %9 = arith.truncf %8 : vector<32x64xf32> to vector<32x64xbf16>
    %cst_4 = arith.constant dense<0.000000e+00> : vector<64x64xf32>
    %10 = tpu.matmul %5, %7, %cst_4 {dimension_numbers = #tpu.dot_dimension_numbers<[0], [0], [1], [1], [0, 1, 1, 1], [], []>} : vector<4x64xbf16>, vector<4x64xbf16>, vector<64x64xf32> -> vector<64x64xf32>
    %cst_5 = arith.constant dense<0xFF800000> : vector<64xf32>
    %11 = vector.multi_reduction <maximumf>, %10, %cst_5 [1] : vector<64x64xf32> to vector<64xf32>
    %12 = vector.shape_cast %11 : vector<64xf32> to vector<64x1xf32>
    %13 = vector.broadcast %12 : vector<64x1xf32> to vector<64x64xf32>
    %14 = arith.subf %10, %13 : vector<64x64xf32>
    %15 = math.exp %14 : vector<64x64xf32>
    %cst_6 = arith.constant dense<0.000000e+00> : vector<64xf32>
    %16 = vector.multi_reduction <add>, %15, %cst_6 [1] : vector<64x64xf32> to vector<64xf32>
    %17 = vector.shape_cast %16 : vector<64xf32> to vector<64x1xf32>
    %18 = tpu.reciprocal %17 {approx = true} : vector<64x1xf32> -> vector<64x1xf32>
    %19 = vector.broadcast %18 : vector<64x1xf32> to vector<64x64xf32>
    %20 = arith.mulf %15, %19 : vector<64x64xf32>
    %21 = arith.truncf %20 : vector<64x64xf32> to vector<64x64xbf16>
    %cst_7 = arith.constant dense<0.000000e+00> : vector<32x64xf32>
    %22 = tpu.matmul %9, %21, %cst_7 {dimension_numbers = #tpu.dot_dimension_numbers<[1], [1], [0], [0], [0, 0, 1, 0], [], []>} : vector<32x64xbf16>, vector<64x64xbf16>, vector<32x64xf32> -> vector<32x64xf32>
    %23 = vector.extract_strided_slice %3 {offsets = [0, 64], sizes = [4, 64], strides = [1, 1]} : vector<40x128xf32> to vector<4x64xf32>
    %24 = arith.truncf %23 : vector<4x64xf32> to vector<4x64xbf16>
    %25 = vector.extract_strided_slice %3 {offsets = [4, 64], sizes = [4, 64], strides = [1, 1]} : vector<40x128xf32> to vector<4x64xf32>
    %26 = arith.truncf %25 : vector<4x64xf32> to vector<4x64xbf16>
    %27 = vector.extract_strided_slice %3 {offsets = [8, 64], sizes = [32, 64], strides = [1, 1]} : vector<40x128xf32> to vector<32x64xf32>
    %28 = arith.truncf %27 : vector<32x64xf32> to vector<32x64xbf16>
    %cst_8 = arith.constant dense<0.000000e+00> : vector<64x64xf32>
    %29 = tpu.matmul %24, %26, %cst_8 {dimension_numbers = #tpu.dot_dimension_numbers<[0], [0], [1], [1], [0, 1, 1, 1], [], []>} : vector<4x64xbf16>, vector<4x64xbf16>, vector<64x64xf32> -> vector<64x64xf32>
    %cst_9 = arith.constant dense<0xFF800000> : vector<64xf32>
    %30 = vector.multi_reduction <maximumf>, %29, %cst_9 [1] : vector<64x64xf32> to vector<64xf32>
    %31 = vector.shape_cast %30 : vector<64xf32> to vector<64x1xf32>
    %32 = vector.broadcast %31 : vector<64x1xf32> to vector<64x64xf32>
    %33 = arith.subf %29, %32 : vector<64x64xf32>
    %34 = math.exp %33 : vector<64x64xf32>
    %cst_10 = arith.constant dense<0.000000e+00> : vector<64xf32>
    %35 = vector.multi_reduction <add>, %34, %cst_10 [1] : vector<64x64xf32> to vector<64xf32>
    %36 = vector.shape_cast %35 : vector<64xf32> to vector<64x1xf32>
    %37 = tpu.reciprocal %36 {approx = true} : vector<64x1xf32> -> vector<64x1xf32>
    %38 = vector.broadcast %37 : vector<64x1xf32> to vector<64x64xf32>
    %39 = arith.mulf %34, %38 : vector<64x64xf32>
    %40 = arith.truncf %39 : vector<64x64xf32> to vector<64x64xbf16>
    %cst_11 = arith.constant dense<0.000000e+00> : vector<32x64xf32>
    %41 = tpu.matmul %28, %40, %cst_11 {dimension_numbers = #tpu.dot_dimension_numbers<[1], [1], [0], [0], [0, 0, 1, 0], [], []>} : vector<32x64xbf16>, vector<64x64xbf16>, vector<32x64xf32> -> vector<32x64xf32>
    %42 = tpu.concatenate %22, %41 in 1 : vector<32x64xf32>, vector<32x64xf32> -> vector<32x128xf32>
    %c0_12 = arith.constant 0 : index
    %43 = memref.load %arg4[%c0_12] : memref<1xf32, #tpu.memory_space<smem>>
    %44 = vector.broadcast %43 : f32 to vector<32x128xf32>
    %45 = arith.mulf %44, %42 : vector<32x128xf32>
    %c0_13 = arith.constant 0 : index
    %c0_14 = arith.constant 0 : index
    %c0_15 = arith.constant 0 : index
    %46 = vector.load %arg1[%c0_13, %c0_14, %c0_15] : memref<1x32x128xf32, #tpu.memory_space<vmem>>, vector<1x32x128xf32>
    %47 = vector.shape_cast %46 : vector<1x32x128xf32> to vector<32x128xf32>
    %48 = arith.addf %45, %47 : vector<32x128xf32>
    %c0_16 = arith.constant 0 : index
    %c0_17 = arith.constant 0 : index
    %c0_18 = arith.constant 0 : index
    %49 = vector.load %arg5[%c0_16, %c0_17, %c0_18] : memref<1x32x128xf32, #tpu.memory_space<vmem>>, vector<1x32x128xf32>
    %50 = vector.shape_cast %49 : vector<1x32x128xf32> to vector<32x128xf32>
    %51 = vector.shape_cast %48 : vector<32x128xf32> to vector<1x32x128xf32>
    tpu.vector_store %arg5[%c0_16, %c0_17, %c0_18], %51 {strides = array<i32>} : memref<1x32x128xf32, #tpu.memory_space<vmem>>, vector<1x32x128xf32>,
    return
  }
  func.func @transform_0(%arg0: i32) -> (i32, i32, i32) {
    %c0_i32 = arith.constant 0 : i32
    %c0_i32_0 = arith.constant 0 : i32
    %c0_i32_1 = arith.constant 0 : i32
    return %arg0, %c0_i32, %c0_i32_0 : i32, i32, i32
  }
  func.func @transform_1(%arg0: i32) -> (i32, i32, i32) {
    %c0_i32 = arith.constant 0 : i32
    %c0_i32_0 = arith.constant 0 : i32
    %c0_i32_1 = arith.constant 0 : i32
    return %arg0, %c0_i32, %c0_i32_0 : i32, i32, i32
  }
  func.func @transform_2(%arg0: i32) -> (i32, i32) {
    %c0_i32 = arith.constant 0 : i32
    %c0_i32_0 = arith.constant 0 : i32
    %c0_i32_1 = arith.constant 0 : i32
    return %c0_i32, %c0_i32_0 : i32, i32
  }
  func.func @transform_3(%arg0: i32) -> i32 {
    %c0_i32 = arith.constant 0 : i32
    %c0_i32_0 = arith.constant 0 : i32
    return %c0_i32 : i32
  }
  func.func @transform_4(%arg0: i32) -> (i32, i32, i32) {
    %c0_i32 = arith.constant 0 : i32
    %c0_i32_0 = arith.constant 0 : i32
    %c0_i32_1 = arith.constant 0 : i32
    return %arg0, %c0_i32, %c0_i32_0 : i32, i32, i32
  }
}

</mosaic_0001>

<bundles_post_ra>
// kernel: self_attention.1
= control target key start
LH: loop header
LB: loop body
LE: loop exit
PB: predicated region body
PF: predicated region fallthrough
CT: control target
= control target key end

     0   :  { %vm67_vm0 = vcmask 1040384   ;;  %v895_v0 = vmov 0.0   ;;  %vm896_vm1 = vmmov 0   ;;  %v897_v2 = vmov 0   ;;  %s1081_s1 = inlined_call_operand.vmem [shape: bf16[1,33,128], index: 1, kind: input, shape index: {}]   ;;  %s1082_s2 = inlined_call_operand.vmem [shape: bf16[40,33], index: 2, kind: input, shape index: {}]   ;;  %s1083_s3 = inlined_call_operand.<no memory space> [shape: f32[1], index: 3, kind: input, shape index: {}]   ;;  %s1084_s0 = inlined_call_operand.vmem [shape: f32[1,32,128], index: 0, kind: input, shape index: {}, may-alias: {0,4}]   ;;  %s1085_s4 = inlined_call_operand.vmem [shape: f32[1,32,128], index: 4, kind: output, shape index: {}, may-alias: {0,4}]  }
   0x1   :  { %749 = vmatprep.subr.bf16.mxu0 %v895_v0  ;;  %v825_v1 = vld [vmem:[%s1081_s1] sm:$0xff]   ;;  %755 = vmatprep.mubr.msk.bf16.mxu0 %vm896_vm1, %v895_v0  ;;  %v69_v3 = vsel %vm67_vm0, 65535, %v897_v2  ;;  %v826_v4 = vld [vmem:[%s1081_s1 + $0x8] sm:$0xff]   ;;  %v827_v5 = vld [vmem:[%s1081_s1 + $0x10] ss:$0 sps:$4 sm:$0x11]  }
   0x2   :  { %750 = vmatpush3.bf16.msra.mxu0 %v825_v1  ;;  %v71_v6 = vand.u32 %v827_v5, %v69_v3  ;;  %v828_v7 = vld [vmem:[%s1082_s2] sm:$0xff]   ;;  %vm57_vm2 = vcmask 269312   ;;  %v829_v8 = vld [vmem:[%s1082_s2 + $0x8] sm:$0xff]   ;;  %vm163_vm3 = vcmask 1041408   ;;  %vm150_vm4 = vcmask 31744  }
   0x3   :  { %751 = vmatprep.subr.bf16.mxu0 %v895_v0  ;;  %vm232_vm5 = vcmask 523264   ;;  %v830_v23 = vld [vmem:[%s1082_s2 + $0x10] ss:$0 sps:$4 sm:$0xff]   ;;  %s898_s2 = smov 64  }
   0x6   :  { %752 = vmatpush3.bf16.msra.mxu0 %v826_v4 }
   0x7   :  { %753 = vmatprep.subr.bf16.mxu0 %v895_v0 }
   0xa   :  { %754 = vmatpush3.bf16.msra.mxu0 %v71_v6 }
   0xd   :  { %756 = vmatmul.mubr.msk.bf16.vlgmr.msra.gmra.mrb[0].mxu0 %vm57_vm2, %v828_v7 }
   0xe   :  { %759 = vmatprep.mubr.msk.bf16.mxu0 %vm896_vm1, %v895_v0 }
  0x15   :  { %760 = vmatmul.mubr.msk.bf16.gmra.mrb[4].mxu0 %vm57_vm2, %v829_v8 }
  0x16   :  { %763 = vmatprep.mubr.msk.bf16.mxu0 %vm896_vm1, %v895_v0 }
  0x1d   :  { %764 = vmatmul.mubr.msk.bf16.gmra.mrb[8].mxu0 %vm57_vm2, %v830_v23 }
  0xe0   :  { %v107_v9 = vpop.f32.mrb[0].mxu0 }
  0xe1   :  { %v944_v10 = vpack.c.bf16 %v107_v9, %v107_v9  ;;  %v757_v11 = vpop.f32.mrb[1].mxu0 }
  0xe2   :  { %v110_v12 = vpop.f32.mrb[2].mxu0 }
  0xe3   :  { %132 = vxpose.xlu0.c.b16.start.end [1/1] (short) (narrow) %v944_v10, 64  ;;  %v758_v13 = vpop.f32.mrb[3].mxu0  ;;  %v948_v14 = vrot.slane %v944_v10, 2 }
  0xe5   :  { %811 = vmatprep.subr.msk.bf16.mxu1 %vm163_vm3, %v948_v14  ;;  %v165_v15 = vsel %vm163_vm3, %v948_v14, 0 }
  0xe6   :  { %768 = vmatpush3.bf16.msra.mxu1 %v165_v15 }
  0xe8   :  { %v115_v16 = vpop.f32.mrb[4].mxu0 }
  0xe9   :  { %v954_v17 = vpack.c.bf16 %v115_v16, %v110_v12  ;;  %v761_v18 = vpop.f32.mrb[5].mxu0 }
 0x149   :  { %v140_v19 = vpop.trf.xlu0 }
 0x14a   :  { %769 = vmatprep.mubr.msk.bf16.mxu1 %vm150_vm4, %v140_v19  ;;  %v118_v19 = vpop.f32.mrb[6].mxu0 }
 0x14d   :  { %v141_v20 = vpop.trf.xlu0 }
 0x14e   :  { %770 = vmatmul.mubr.msk.bf16.vlgmr.msra.gmra.mrb[0].mxu1 %vm150_vm4, %v141_v20  ;;  %v762_v20 = vpop.f32.mrb[7].mxu0 }
 0x151   :  { %v142_v21 = vpop.trf.xlu0 }
 0x152   :  { %773 = vmatprep.mubr.msk.bf16.mxu1 %vm150_vm4, %v142_v21  ;;  %v123_v21 = vpop.f32.mrb[8].mxu0 }
 0x153   :  { %v765_v23 = vpop.f32.mrb[9].mxu0 }
 0x155   :  { %v143_v22 = vpop.trf.xlu0 }
 0x156   :  { %774 = vmatmul.mubr.msk.bf16.gmra.mrb[4].mxu1 %vm150_vm4, %v143_v22  ;;  %v986_v22 = vpack.c.bf16 %v123_v21, %v118_v19 }
 0x157   :  { %785 = vmatprep.mubr.msk.bf16.mxu1 %vm232_vm5, %v954_v17 }
 0x221   :  { %v771_v24 = vpop.f32.mrb[0].mxu1 }
 0x222   :  { %v201_v25 = vpop.f32.mrb[1].mxu1  ;;  %v239_v30 = vsel %vm232_vm5, %v771_v24, -inf }
 0x223   :  { %v772_v26 = vpop.f32.mrb[2].mxu1  ;;  %v233_v27 = vsel %vm232_vm5, %v201_v25, -inf }
 0x224   :  { %234 = vmax.xlane.f32.xlu0 %v233_v27  ;;  %v204_v28 = vpop.f32.mrb[3].mxu1  ;;  %v242_v35 = vsel %vm232_vm5, %v772_v26, -inf }
 0x225   :  { %v236_v29 = vsel %vm232_vm5, %v204_v28, -inf }
 0x226   :  { %237 = vmax.xlane.f32.xlu1 %v236_v29 }
 0x229   :  { %v775_v31 = vpop.f32.mrb[4].mxu1 }
 0x22a   :  { %240 = vmax.xlane.f32.xlu1 %v239_v30  ;;  %v217_v32 = vpop.f32.mrb[5].mxu1  ;;  %v251_v38 = vsel %vm232_vm5, %v775_v31, -inf }
 0x22b   :  { %v776_v33 = vpop.f32.mrb[6].mxu1  ;;  %v245_v36 = vsel %vm232_vm5, %v217_v32, -inf }
 0x22c   :  { %v220_v34 = vpop.f32.mrb[7].mxu1  ;;  %v254_v39 = vsel %vm232_vm5, %v776_v33, -inf }
 0x22d   :  { %v248_v37 = vsel %vm232_vm5, %v220_v34, -inf }
 0x22e   :  { %243 = vmax.xlane.f32.xlu1 %v242_v35 }
 0x232   :  { %246 = vmax.xlane.f32.xlu1 %v245_v36 }
 0x236   :  { %249 = vmax.xlane.f32.xlu1 %v248_v37 }
 0x23a   :  { %252 = vmax.xlane.f32.xlu1 %v251_v38 }
 0x23e   :  { %255 = vmax.xlane.f32.xlu1 %v254_v39 }
 0x2b1   :  { %v235_v40 = vpop.xlane.xlu0 %234 }
 0x2b2   :  { %v257_v41 = vsub.f32 %v201_v25, %v235_v40 }
 0x2b3   :  { %v238_v42 = vpop.xlane.xlu1 %237 }
 0x2b4   :  { %v265_v43 = vmul.f32 1.442695, %v257_v41  ;;  %v258_v44 = vsub.f32 %v204_v28, %v238_v42 }
 0x2b6   :  { %831 = vpow2.f32 %v265_v43  ;;  %v267_v45 = vmul.f32 1.442695, %v258_v44 }
 0x2b7   :  { %v241_v46 = vpop.xlane.xlu1 %240 }
 0x2b8   :  { %833 = vpow2.f32 %v267_v45  ;;  %v259_v47 = vsub.f32 %v771_v24, %v241_v46  ;;  %v126_v24 = vpop.f32.mrb[10].mxu0 }
 0x2b9   :  { %v766_v25 = vpop.f32.mrb[11].mxu0 }
 0x2ba   :  { %v269_v48 = vmul.f32 1.442695, %v259_v47 }
 0x2bb   :  { %v244_v49 = vpop.xlane.xlu1 %243 }
 0x2bc   :  { %835 = vpow2.f32 %v269_v48  ;;  %v260_v50 = vsub.f32 %v772_v26, %v244_v49 }
 0x2be   :  { %v271_v51 = vmul.f32 1.442695, %v260_v50 }
 0x2bf   :  { %v247_v52 = vpop.xlane.xlu1 %246 }
 0x2c0   :  { %v832_v53 = vpop.eup %831  ;;  %837 = vpow2.f32 %v271_v51  ;;  %v261_v54 = vsub.f32 %v217_v32, %v247_v52 }
 0x2c1   :  { %v281_v55 = vsel %vm232_vm5, %v832_v53, 0.0 }
 0x2c2   :  { %v834_v56 = vpop.eup %833  ;;  %v273_v57 = vmul.f32 1.442695, %v261_v54  ;;  %282 = vadd.xlane.f32.xlu1 %v281_v55 }
 0x2c3   :  { %v250_v58 = vpop.xlane.xlu1 %249  ;;  %v284_v59 = vsel %vm232_vm5, %v834_v56, 0.0 }
 0x2c4   :  { %839 = vpow2.f32 %v273_v57  ;;  %v262_v60 = vsub.f32 %v220_v34, %v250_v58  ;;  %285 = vadd.xlane.f32.xlu0 %v284_v59 }
 0x2c6   :  { %v836_v61 = vpop.eup %835  ;;  %v275_v62 = vmul.f32 1.442695, %v262_v60 }
 0x2c7   :  { %v253_v63 = vpop.xlane.xlu1 %252  ;;  %v287_v0 = vsel %vm232_vm5, %v836_v61, 0.0 }
 0x2c8   :  { %841 = vpow2.f32 %v275_v62  ;;  %v263_v1 = vsub.f32 %v775_v31, %v253_v63  ;;  %288 = vadd.xlane.f32.xlu1 %v287_v0 }
 0x2ca   :  { %v838_v2 = vpop.eup %837  ;;  %v277_v3 = vmul.f32 1.442695, %v263_v1 }
 0x2cb   :  { %v256_v4 = vpop.xlane.xlu1 %255  ;;  %v290_v5 = vsel %vm232_vm5, %v838_v2, 0.0 }
 0x2cc   :  { %843 = vpow2.f32 %v277_v3  ;;  %v264_v6 = vsub.f32 %v776_v33, %v256_v4  ;;  %291 = vadd.xlane.f32.xlu0 %v290_v5 }
 0x2ce   :  { %v840_v7 = vpop.eup %839  ;;  %v279_v8 = vmul.f32 1.442695, %v264_v6 }
 0x2cf   :  { %v293_v9 = vsel %vm232_vm5, %v840_v7, 0.0 }
 0x2d0   :  { %845 = vpow2.f32 %v279_v8  ;;  %294 = vadd.xlane.f32.xlu1 %v293_v9 }
 0x2d2   :  { %v842_v11 = vpop.eup %841 }
 0x2d3   :  { %v296_v12 = vsel %vm232_vm5, %v842_v11, 0.0 }
 0x2d4   :  { %297 = vadd.xlane.f32.xlu0 %v296_v12 }
 0x2d6   :  { %v844_v13 = vpop.eup %843 }
 0x2d7   :  { %v299_v15 = vsel %vm232_vm5, %v844_v13, 0.0 }
 0x2d8   :  { %300 = vadd.xlane.f32.xlu1 %v299_v15 }
 0x2da   :  { %v846_v16 = vpop.eup %845 }
 0x2db   :  { %v302_v18 = vsel %vm232_vm5, %v846_v16, 0.0 }
 0x2dc   :  { %303 = vadd.xlane.f32.xlu0 %v302_v18 }
 0x2e9   :  { %392 = vrot.lane.b32.xlu1 %v944_v10, %s898_s2 }
 0x2f2   :  { %411 = vrot.lane.b32.xlu0 %v948_v14, %s898_s2 }
 0x34f   :  { %v283_v26 = vpop.xlane.xlu1 %282 }
 0x350   :  { %847 = vrcp.f32 %v283_v26 }
 0x351   :  { %v286_v27 = vpop.xlane.xlu0 %285 }
 0x352   :  { %849 = vrcp.f32 %v286_v27 }
 0x355   :  { %v289_v28 = vpop.xlane.xlu1 %288 }
 0x356   :  { %851 = vrcp.f32 %v289_v28 }
 0x359   :  { %v292_v29 = vpop.xlane.xlu0 %291 }
 0x35a   :  { %v848_v30 = vpop.eup %847  ;;  %853 = vrcp.f32 %v292_v29 }
 0x35b   :  { %v313_v14 = vmul.f32 %v848_v30, %v832_v53 }
 0x35c   :  { %v850_v10 = vpop.eup %849 }
 0x35d   :  { %v295_v31 = vpop.xlane.xlu1 %294  ;;  %v314_v32 = vmul.f32 %v850_v10, %v834_v56 }
 0x35e   :  { %855 = vrcp.f32 %v295_v31 }
 0x35f   :  { %v321_v33 = vpack.c.bf16 %v314_v32, %v313_v14 }
 0x360   :  { %v852_v36 = vpop.eup %851 }
 0x361   :  { %v298_v34 = vpop.xlane.xlu0 %297  ;;  %812 = vmatprep.subr.msk.bf16.mxu1 %vm232_vm5, %v321_v33  ;;  %v332_v35 = vsel %vm232_vm5, %v321_v33, 0  ;;  %v315_v39 = vmul.f32 %v852_v36, %v836_v61 }
 0x362   :  { %857 = vrcp.f32 %v298_v34  ;;  %778 = vmatpush3.bf16.xpose.msra.mxu1 %v332_v35 }
 0x364   :  { %v854_v37 = vpop.eup %853 }
 0x365   :  { %v301_v38 = vpop.xlane.xlu1 %300  ;;  %v316_v40 = vmul.f32 %v854_v37, %v838_v2 }
 0x366   :  { %859 = vrcp.f32 %v301_v38 }
 0x367   :  { %v322_v41 = vpack.c.bf16 %v316_v40, %v315_v39 }
 0x368   :  { %v856_v45 = vpop.eup %855 }
 0x369   :  { %v304_v42 = vpop.xlane.xlu0 %303  ;;  %813 = vmatprep.subr.msk.bf16.mxu1 %vm232_vm5, %v322_v41  ;;  %v393_v43 = vpop.permute.xlu1 %392  ;;  %v335_v44 = vsel %vm232_vm5, %v322_v41, 0  ;;  %v317_v47 = vmul.f32 %v856_v45, %v840_v7 }
 0x36a   :  { %861 = vrcp.f32 %v304_v42  ;;  %780 = vmatpush3.bf16.xpose.msra.mxu1 %v335_v44  ;;  %395 = vxpose.xlu1.c.b16.start.end [1/1] (short) (narrow) %v393_v43, 64 }
 0x36c   :  { %v858_v46 = vpop.eup %857 }
 0x36d   :  { %v318_v48 = vmul.f32 %v858_v46, %v842_v11  ;;  %v412_v57 = vpop.permute.xlu0 %411 }
 0x36e   :  { %v426_v58 = vsel %vm163_vm3, %v412_v57, 0 }
 0x36f   :  { %v323_v49 = vpack.c.bf16 %v318_v48, %v317_v47 }
 0x370   :  { %v860_v51 = vpop.eup %859 }
 0x371   :  { %814 = vmatprep.subr.msk.bf16.mxu1 %vm232_vm5, %v323_v49  ;;  %v338_v50 = vsel %vm232_vm5, %v323_v49, 0  ;;  %v319_v53 = vmul.f32 %v860_v51, %v844_v13 }
 0x372   :  { %782 = vmatpush3.bf16.xpose.msra.mxu1 %v338_v50 }
 0x374   :  { %v862_v52 = vpop.eup %861 }
 0x375   :  { %v320_v54 = vmul.f32 %v862_v52, %v846_v16 }
 0x377   :  { %v324_v55 = vpack.c.bf16 %v320_v54, %v319_v53 }
 0x379   :  { %815 = vmatprep.subr.msk.bf16.mxu1 %vm232_vm5, %v324_v55  ;;  %v341_v56 = vsel %vm232_vm5, %v324_v55, 0 }
 0x37a   :  { %784 = vmatpush3.bf16.xpose.msra.mxu1 %v341_v56 }
 0x37b   :  { %816 = vmatprep.subr.msk.bf16.mxu1 %vm163_vm3, %v412_v57 }
 0x381   :  { %786 = vmatmul.mubr.msk.bf16.vlgmr.msra.gmra.mrb[8].mxu1 %vm232_vm5, %v986_v22 }
 0x382   :  { %790 = vmatpush3.bf16.msra.mxu1 %v426_v58 }
 0x3d0   :  { %v403_v59 = vpop.trf.xlu1 }
 0x3d1   :  { %791 = vmatprep.mubr.msk.bf16.mxu1 %vm150_vm4, %v403_v59 }
 0x3d4   :  { %v404_v60 = vpop.trf.xlu1 }
 0x3d5   :  { %792 = vmatmul.mubr.msk.bf16.vlgmr.msra.gmra.mrb[12].mxu1 %vm150_vm4, %v404_v60 }
 0x3d8   :  { %v405_v61 = vpop.trf.xlu1 }
 0x3d9   :  { %795 = vmatprep.mubr.msk.bf16.mxu1 %vm150_vm4, %v405_v61 }
 0x3dc   :  { %v406_v62 = vpop.trf.xlu1 }
 0x3dd   :  { %796 = vmatmul.mubr.msk.bf16.gmra.mrb[16].mxu1 %vm150_vm4, %v406_v62 }
 0x454   :  { %v1004_v63 = vpop.f32.mrb[8].mxu1 }
 0x455   :  { %v1006_v0 = vpop.f32.mrb[9].mxu1 }
 0x456   :  { %v1008_v1 = vpop.f32.mrb[10].mxu1 }
 0x457   :  { %v1010_v2 = vpop.f32.mrb[11].mxu1 }
 0x4a8   :  { %v793_v3 = vpop.f32.mrb[12].mxu1 }
 0x4a9   :  { %v462_v4 = vpop.f32.mrb[13].mxu1  ;;  %v499_v9 = vsel %vm232_vm5, %v793_v3, -inf }
 0x4aa   :  { %v794_v5 = vpop.f32.mrb[14].mxu1  ;;  %v493_v6 = vsel %vm232_vm5, %v462_v4, -inf }
 0x4ab   :  { %494 = vmax.xlane.f32.xlu0 %v493_v6  ;;  %v465_v7 = vpop.f32.mrb[15].mxu1  ;;  %v502_v13 = vsel %vm232_vm5, %v794_v5, -inf }
 0x4ac   :  { %v496_v8 = vsel %vm232_vm5, %v465_v7, -inf }
 0x4ad   :  { %497 = vmax.xlane.f32.xlu1 %v496_v8 }
 0x4af   :  { %500 = vmax.xlane.f32.xlu0 %v499_v9 }
 0x4b0   :  { %v797_v11 = vpop.f32.mrb[16].mxu1 }
 0x4b1   :  { %v478_v12 = vpop.f32.mrb[17].mxu1  ;;  %v511_v20 = vsel %vm232_vm5, %v797_v11, -inf }
 0x4b2   :  { %v798_v15 = vpop.f32.mrb[18].mxu1  ;;  %v505_v18 = vsel %vm232_vm5, %v478_v12, -inf }
 0x4b3   :  { %503 = vmax.xlane.f32.xlu0 %v502_v13  ;;  %v481_v16 = vpop.f32.mrb[19].mxu1  ;;  %v514_v21 = vsel %vm232_vm5, %v798_v15, -inf }
 0x4b4   :  { %v508_v19 = vsel %vm232_vm5, %v481_v16, -inf }
 0x4b7   :  { %506 = vmax.xlane.f32.xlu0 %v505_v18 }
 0x4bb   :  { %509 = vmax.xlane.f32.xlu0 %v508_v19 }
 0x4bf   :  { %512 = vmax.xlane.f32.xlu0 %v511_v20 }
 0x4c3   :  { %515 = vmax.xlane.f32.xlu0 %v514_v21 }
 0x538   :  { %v495_v23 = vpop.xlane.xlu0 %494 }
 0x539   :  { %v517_v24 = vsub.f32 %v462_v4, %v495_v23 }
 0x53a   :  { %v498_v25 = vpop.xlane.xlu1 %497 }
 0x53b   :  { %v525_v26 = vmul.f32 1.442695, %v517_v24  ;;  %v518_v27 = vsub.f32 %v465_v7, %v498_v25 }
 0x53c   :  { %v501_v28 = vpop.xlane.xlu0 %500 }
 0x53d   :  { %863 = vpow2.f32 %v525_v26  ;;  %v527_v29 = vmul.f32 1.442695, %v518_v27  ;;  %v519_v30 = vsub.f32 %v793_v3, %v501_v28 }
 0x53f   :  { %865 = vpow2.f32 %v527_v29  ;;  %v529_v10 = vmul.f32 1.442695, %v519_v30 }
 0x540   :  { %v504_v31 = vpop.xlane.xlu0 %503 }
 0x541   :  { %867 = vpow2.f32 %v529_v10  ;;  %v520_v14 = vsub.f32 %v794_v5, %v504_v31 }
 0x543   :  { %v531_v32 = vmul.f32 1.442695, %v520_v14 }
 0x544   :  { %v507_v33 = vpop.xlane.xlu0 %506 }
 0x545   :  { %869 = vpow2.f32 %v531_v32  ;;  %v521_v34 = vsub.f32 %v478_v12, %v507_v33 }
 0x547   :  { %v864_v35 = vpop.eup %863  ;;  %v533_v36 = vmul.f32 1.442695, %v521_v34 }
 0x548   :  { %v510_v37 = vpop.xlane.xlu0 %509  ;;  %v541_v38 = vsel %vm232_vm5, %v864_v35, 0.0 }
 0x549   :  { %v866_v39 = vpop.eup %865  ;;  %871 = vpow2.f32 %v533_v36  ;;  %v522_v40 = vsub.f32 %v481_v16, %v510_v37  ;;  %542 = vadd.xlane.f32.xlu1 %v541_v38 }
 0x54a   :  { %v544_v41 = vsel %vm232_vm5, %v866_v39, 0.0 }
 0x54b   :  { %v868_v42 = vpop.eup %867  ;;  %v535_v43 = vmul.f32 1.442695, %v522_v40  ;;  %545 = vadd.xlane.f32.xlu0 %v544_v41 }
 0x54c   :  { %v513_v44 = vpop.xlane.xlu0 %512  ;;  %v547_v45 = vsel %vm232_vm5, %v868_v42, 0.0 }
 0x54d   :  { %873 = vpow2.f32 %v535_v43  ;;  %v523_v46 = vsub.f32 %v797_v11, %v513_v44  ;;  %548 = vadd.xlane.f32.xlu1 %v547_v45 }
 0x54f   :  { %v870_v47 = vpop.eup %869  ;;  %v537_v48 = vmul.f32 1.442695, %v523_v46  ;;  %v684_v46 = vld [vmem:[%s1084_s0] sm:$0xff] }
 0x550   :  { %v516_v49 = vpop.xlane.xlu0 %515  ;;  %v550_v50 = vsel %vm232_vm5, %v870_v47, 0.0 }
 0x551   :  { %875 = vpow2.f32 %v537_v48  ;;  %v524_v51 = vsub.f32 %v798_v15, %v516_v49  ;;  %551 = vadd.xlane.f32.xlu0 %v550_v50 }
 0x553   :  { %v872_v52 = vpop.eup %871  ;;  %v539_v53 = vmul.f32 1.442695, %v524_v51 }
 0x554   :  { %v553_v54 = vsel %vm232_vm5, %v872_v52, 0.0 }
 0x555   :  { %877 = vpow2.f32 %v539_v53  ;;  %554 = vadd.xlane.f32.xlu1 %v553_v54 }
 0x557   :  { %v874_v55 = vpop.eup %873 }
 0x558   :  { %v556_v56 = vsel %vm232_vm5, %v874_v55, 0.0 }
 0x559   :  { %557 = vadd.xlane.f32.xlu0 %v556_v56 }
 0x55b   :  { %v876_v57 = vpop.eup %875 }
 0x55c   :  { %v559_v58 = vsel %vm232_vm5, %v876_v57, 0.0 }
 0x55d   :  { %560 = vadd.xlane.f32.xlu1 %v559_v58 }
 0x55f   :  { %v878_v59 = vpop.eup %877 }
 0x560   :  { %v562_v60 = vsel %vm232_vm5, %v878_v59, 0.0 }
 0x561   :  { %563 = vadd.xlane.f32.xlu0 %v562_v60 }
 0x56e   :  { %587 = vrot.lane.b32.xlu1 %v954_v17, %s898_s2 }
 0x577   :  { %589 = vrot.lane.b32.xlu0 %v986_v22, %s898_s2 }
 0x5d6   :  { %v543_v61 = vpop.xlane.xlu1 %542 }
 0x5d7   :  { %879 = vrcp.f32 %v543_v61 }
 0x5d8   :  { %v546_v62 = vpop.xlane.xlu0 %545 }
 0x5d9   :  { %881 = vrcp.f32 %v546_v62 }
 0x5da   :  { %v549_v3 = vpop.xlane.xlu1 %548 }
 0x5db   :  { %883 = vrcp.f32 %v549_v3 }
 0x5de   :  { %v552_v4 = vpop.xlane.xlu0 %551 }
 0x5df   :  { %885 = vrcp.f32 %v552_v4 }
 0x5e1   :  { %v880_v5 = vpop.eup %879 }
 0x5e2   :  { %v555_v6 = vpop.xlane.xlu1 %554  ;;  %v573_v8 = vmul.f32 %v880_v5, %v864_v35 }
 0x5e3   :  { %v882_v7 = vpop.eup %881  ;;  %887 = vrcp.f32 %v555_v6 }
 0x5e4   :  { %v574_v9 = vmul.f32 %v882_v7, %v866_v39  ;;  %v679_v39 = vstv %s1083_s3 }
 0x5e5   :  { %v884_v17 = vpop.eup %883 }
 0x5e6   :  { %v558_v11 = vpop.xlane.xlu0 %557  ;;  %v581_v12 = vpack.c.bf16 %v574_v9, %v573_v8  ;;  %v575_v16 = vmul.f32 %v884_v17, %v868_v42  ;;  %v686_v42 = vld [vmem:[%s1084_s0 + $0x10] sm:$0xff] }
 0x5e7   :  { %889 = vrcp.f32 %v558_v11 }
 0x5e8   :  { %817 = vmatprep.subr.msk.bf16.mxu0 %vm232_vm5, %v581_v12  ;;  %v598_v22 = vsel %vm232_vm5, %v581_v12, 0 }
 0x5e9   :  { %v886_v13 = vpop.eup %885  ;;  %800 = vmatpush3.bf16.xpose.msra.mxu0 %v598_v22 }
 0x5ea   :  { %v561_v15 = vpop.xlane.xlu1 %560  ;;  %v576_v18 = vmul.f32 %v886_v13, %v870_v47 }
 0x5eb   :  { %891 = vrcp.f32 %v561_v15 }
 0x5ec   :  { %v582_v19 = vpack.c.bf16 %v576_v18, %v575_v16 }
 0x5ed   :  { %v888_v23 = vpop.eup %887 }
 0x5ee   :  { %v588_v20 = vpop.permute.xlu1 %587  ;;  %818 = vmatprep.subr.msk.bf16.mxu0 %vm232_vm5, %v582_v19  ;;  %v564_v21 = vpop.xlane.xlu0 %563  ;;  %v601_v24 = vsel %vm232_vm5, %v582_v19, 0  ;;  %v577_v26 = vmul.f32 %v888_v23, %v872_v52 }
 0x5ef   :  { %893 = vrcp.f32 %v564_v21  ;;  %807 = vmatprep.mubr.msk.bf16.mxu0 %vm232_vm5, %v588_v20 }
 0x5f1   :  { %v890_v25 = vpop.eup %889  ;;  %802 = vmatpush3.bf16.xpose.msra.mxu0 %v601_v24 }
 0x5f2   :  { %v578_v27 = vmul.f32 %v890_v25, %v874_v55  ;;  %v590_v34 = vpop.permute.xlu0 %589 }
 0x5f4   :  { %v583_v28 = vpack.c.bf16 %v578_v27, %v577_v26 }
 0x5f5   :  { %v892_v29 = vpop.eup %891 }
 0x5f6   :  { %819 = vmatprep.subr.msk.bf16.mxu0 %vm232_vm5, %v583_v28  ;;  %v604_v30 = vsel %vm232_vm5, %v583_v28, 0  ;;  %v579_v31 = vmul.f32 %v892_v29, %v876_v57 }
 0x5f9   :  { %v894_v10 = vpop.eup %893  ;;  %804 = vmatpush3.bf16.xpose.msra.mxu0 %v604_v30 }
 0x5fa   :  { %v580_v14 = vmul.f32 %v894_v10, %v878_v59 }
 0x5fc   :  { %v584_v32 = vpack.c.bf16 %v580_v14, %v579_v31 }
 0x5fe   :  { %820 = vmatprep.subr.msk.bf16.mxu0 %vm232_vm5, %v584_v32  ;;  %v607_v33 = vsel %vm232_vm5, %v584_v32, 0 }
 0x601   :  { %806 = vmatpush3.bf16.xpose.msra.mxu0 %v607_v33 }
 0x608   :  { %808 = vmatmul.mubr.msk.bf16.vlgmr.msra.gmra.mrb[12].mxu0 %vm232_vm5, %v590_v34 }
 0x6db   :  { %v809_v35 = vpop.f32.mrb[12].mxu0 }
 0x6dc   :  { %666 = vrot.lane.b32.xlu0 %v809_v35, %s898_s2  ;;  %v643_v36 = vpop.f32.mrb[13].mxu0 }
 0x6dd   :  { %662 = vrot.lane.b32.xlu1 %v643_v36, %s898_s2  ;;  %v810_v37 = vpop.f32.mrb[14].mxu0 }
 0x6de   :  { %v646_v38 = vpop.f32.mrb[15].mxu0 }
 0x6e1   :  { %664 = vrot.lane.b32.xlu1 %v646_v38, %s898_s2 }
 0x6e5   :  { %668 = vrot.lane.b32.xlu1 %v810_v37, %s898_s2 }
 0x74e   :  { %v667_v40 = vpop.permute.xlu0 %666 }
 0x74f   :  { %v676_v41 = vsel %vm232_vm5, %v1004_v63, %v667_v40  ;;  %v663_v43 = vpop.permute.xlu1 %662 }
 0x750   :  { %v682_v44 = vmul.f32 %v679_v39, %v676_v41  ;;  %v674_v45 = vsel %vm232_vm5, %v1006_v0, %v663_v43 }
 0x751   :  { %v680_v47 = vmul.f32 %v679_v39, %v674_v45 }
 0x752   :  { %v690_v48 = vadd.f32 %v686_v42, %v682_v44 }
 0x753   :  { %v688_v49 = vadd.f32 %v684_v46, %v680_v47  ;;  %v665_v50 = vpop.permute.xlu1 %664 }
 0x754   :  { %694 = vst [vmem:[%s1085_s4 + $0x10] sm:$0xff] %v690_v48  ;;  %v675_v63 = vsel %vm232_vm5, %v1010_v2, %v665_v50 }
 0x755   :  { %v681_v0 = vmul.f32 %v679_v39, %v675_v63 }
 0x757   :  { %v669_v53 = vpop.permute.xlu1 %668 }
 0x758   :  { %v677_v54 = vsel %vm232_vm5, %v1008_v1, %v669_v53 }
 0x759   :  { %v683_v2 = vmul.f32 %v679_v39, %v677_v54 }
 0x75b   :  { %v685_v51 = vld [vmem:[%s1084_s0 + $0x8] sm:$0xff] }
 0x75c   :  { %692 = vst [vmem:[%s1085_s4] sm:$0xff] %v688_v49  ;;  %v689_v52 = vadd.f32 %v685_v51, %v681_v0 }
 0x763   :  { %v687_v55 = vld [vmem:[%s1084_s0 + $0x18] sm:$0xff] }
 0x764   :  { %693 = vst [vmem:[%s1085_s4 + $0x8] sm:$0xff] %v689_v52  ;;  %v691_v56 = vadd.f32 %v687_v55, %v683_v2 }
 0x766   :  { %695 = vst [vmem:[%s1085_s4 + $0x18] sm:$0xff] %v691_v56 }

</bundles_post_ra>
